<compile_context>
chip_gen: v5e
topology: v5e:2x2
jax: 0.10.0
libtpu: 0.0.40
codegen_flags: <defaults>
</compile_context>

<pallas_src>
import jax
import jax.numpy as jnp
from jax import lax
from jax.experimental import pallas as pl
from jax.experimental.pallas import tpu as pltpu


def _round_up(x, m):
    return (x + m - 1) // m * m


# --------------------------------------------------------------------------
# Kernel 1: msg = Linear([H@item_emb, (H@item_emb)*user_emb]) per U row tile,
#           accumulating node_msg over the I grid axis.
# --------------------------------------------------------------------------
def _msg_kernel(h_ref, ie_ref, ue_ref, w1_ref, w2_ref, b_ref, msg_ref, acc_ref):
    i = pl.program_id(1)

    @pl.when(i == 0)
    def _():
        acc_ref[...] = jnp.zeros_like(acc_ref)

    # node_msg partial: H_tile(u,i) @ item_emb_tile(i)
    acc_ref[...] += jnp.dot(h_ref[...].astype(jnp.float32), ie_ref[...],
                            preferred_element_type=jnp.float32)

    @pl.when(i == pl.num_programs(1) - 1)
    def _():
        node_msg = acc_ref[...]                              # (tu, d_pad)
        edge = node_msg * ue_ref[...]                        # (tu, d_pad)
        # concat([node_msg, edge]) @ W.T + b  ==  node_msg@w1 + edge@w2 + b
        msg = (jnp.dot(node_msg, w1_ref[...], preferred_element_type=jnp.float32)
               + jnp.dot(edge, w2_ref[...], preferred_element_type=jnp.float32)
               + b_ref[...])
        msg_ref[...] = msg.astype(msg_ref.dtype)


# --------------------------------------------------------------------------
# Kernel 2: norm_emb = H^T @ msg, tiled over (I, U), reduction over U.
# --------------------------------------------------------------------------
def _norm_kernel(h_ref, msg_ref, norm_ref, acc_ref):
    k = pl.program_id(1)

    @pl.when(k == 0)
    def _():
        acc_ref[...] = jnp.zeros_like(acc_ref)

    # H_tile^T @ msg_tile without materializing the transpose (contract dim 0).
    acc_ref[...] += lax.dot_general(
        h_ref[...].astype(jnp.float32), msg_ref[...],
        dimension_numbers=(((0,), (0,)), ((), ())),
        preferred_element_type=jnp.float32)

    @pl.when(k == pl.num_programs(1) - 1)
    def _():
        norm_ref[...] = acc_ref[...].astype(norm_ref.dtype)


def hgbcn4_forward(user_emb, item_emb, hyper_graph, W, b, *,
                   tu=128, ti=128, use_bf16_h=True):
    """HGBCN_4 forward pass with fused, tiled Pallas kernels.

    Args:
      user_emb:    (U, d) f32
      item_emb:    (I, d) f32
      hyper_graph: (U, I) f32 dense incidence matrix (0/1 expected)
      W:           (d, 2d) f32  -- nn.Linear(2d, d).weight
      b:           (d,)    f32  -- nn.Linear(2d, d).bias
      tu, ti:      U / I tile sizes (tu mult. of 8, ti mult. of 128)
      use_bf16_h:  stream hyper_graph as bf16 (exact for 0/1 incidence)
    Returns:
      (norm_emb (I, d), msg (U, d))
    """
    U, I = hyper_graph.shape
    d = user_emb.shape[1]
    f32 = jnp.float32

    d_pad = max(128, _round_up(d, 128))
    U_pad = _round_up(U, tu)
    I_pad = _round_up(I, ti)
    n_u = U_pad // tu
    n_i = I_pad // ti

    h_dtype = jnp.bfloat16 if use_bf16_h else f32
    h_bytes = 2 if use_bf16_h else 4

    # Zero-pad everything (zeros are inert for every op below).
    h_p = jnp.zeros((U_pad, I_pad), h_dtype).at[:U, :I].set(
        hyper_graph.astype(h_dtype))
    ue_p = jnp.zeros((U_pad, d_pad), f32).at[:U, :d].set(user_emb.astype(f32))
    ie_p = jnp.zeros((I_pad, d_pad), f32).at[:I, :d].set(item_emb.astype(f32))
    w1_p = jnp.zeros((d_pad, d_pad), f32).at[:d, :d].set(W[:, :d].T.astype(f32))
    w2_p = jnp.zeros((d_pad, d_pad), f32).at[:d, :d].set(W[:, d:].T.astype(f32))
    b_p = jnp.zeros((1, d_pad), f32).at[0, :d].set(b.astype(f32))

    # ---------------- kernel 1: msg ----------------
    msg_cost = pl.CostEstimate(
        flops=2 * U_pad * I_pad * d_pad + 4 * U_pad * d_pad * d_pad,
        transcendentals=0,
        bytes_accessed=(U_pad * I_pad * h_bytes + I_pad * d_pad * 4
                        + U_pad * d_pad * 4 + 2 * d_pad * d_pad * 4
                        + U_pad * d_pad * 4))

    msg_p = pl.pallas_call(
        _msg_kernel,
        out_shape=jax.ShapeDtypeStruct((U_pad, d_pad), f32),
        grid_spec=pltpu.PrefetchScalarGridSpec(
            num_scalar_prefetch=0,
            grid=(n_u, n_i),
            in_specs=[
                pl.BlockSpec((tu, ti), lambda u, i: (u, i)),       # H tile
                pl.BlockSpec((ti, d_pad), lambda u, i: (i, 0)),    # item_emb tile
                pl.BlockSpec((tu, d_pad), lambda u, i: (u, 0)),    # user_emb tile
                pl.BlockSpec((d_pad, d_pad), lambda u, i: (0, 0)), # w1
                pl.BlockSpec((d_pad, d_pad), lambda u, i: (0, 0)), # w2
                pl.BlockSpec((1, d_pad), lambda u, i: (0, 0)),     # bias
            ],
            out_specs=pl.BlockSpec((tu, d_pad), lambda u, i: (u, 0)),
            scratch_shapes=[pltpu.VMEM((tu, d_pad), jnp.float32)],
        ),
        compiler_params=pltpu.CompilerParams(
            dimension_semantics=("parallel", "arbitrary")),
        cost_estimate=msg_cost,
    )(h_p, ie_p, ue_p, w1_p, w2_p, b_p)

    # ---------------- kernel 2: norm_emb = H^T @ msg ----------------
    norm_cost = pl.CostEstimate(
        flops=2 * U_pad * I_pad * d_pad,
        transcendentals=0,
        bytes_accessed=(U_pad * I_pad * h_bytes + U_pad * d_pad * 4
                        + I_pad * d_pad * 4))

    norm_p = pl.pallas_call(
        _norm_kernel,
        out_shape=jax.ShapeDtypeStruct((I_pad, d_pad), f32),
        grid_spec=pltpu.PrefetchScalarGridSpec(
            num_scalar_prefetch=0,
            grid=(n_i, n_u),
            in_specs=[
                pl.BlockSpec((tu, ti), lambda i, k: (k, i)),       # H tile
                pl.BlockSpec((tu, d_pad), lambda i, k: (k, 0)),    # msg tile
            ],
            out_specs=pl.BlockSpec((ti, d_pad), lambda i, k: (i, 0)),
            scratch_shapes=[pltpu.VMEM((ti, d_pad), jnp.float32)],
        ),
        compiler_params=pltpu.CompilerParams(
            dimension_semantics=("parallel", "arbitrary")),
        cost_estimate=norm_cost,
    )(h_p, msg_p)

    return norm_p[:I, :d], msg_p[:U, :d]


def hgbcn4_reference(user_emb, item_emb, hyper_graph, W, b):
    hp = lax.Precision.HIGHEST
    node_msg = jnp.dot(hyper_graph, item_emb, precision=hp)
    edge = node_msg * user_emb
    cat = jnp.concatenate([node_msg, edge], axis=1)
    msg = jnp.dot(cat, W.T, precision=hp) + b
    norm_emb = jnp.dot(hyper_graph.T, msg, precision=hp)
    return norm_emb, msg


if __name__ == "__main__":
    key = jax.random.PRNGKey(0)
    k_u, k_i, k_h, k_w, k_b = jax.random.split(key, 5)

    # Small, non-tile-aligned shapes to exercise padding + multi-tile grids:
    # U users/hyper-edges, I items/nodes, embedding dim.
    U, I, dim = 272, 200, 32

    user_emb = jax.random.normal(k_u, (U, dim), dtype=jnp.float32)
    item_emb = jax.random.normal(k_i, (I, dim), dtype=jnp.float32)
    # 0/1 hypergraph incidence matrix (dense stand-in for torch.sparse).
    hyper_graph = (jax.random.uniform(k_h, (U, I)) < 0.15).astype(jnp.float32)

    # nn.Linear(2*dim, dim) parameters.
    W = jax.random.normal(k_w, (dim, 2 * dim), dtype=jnp.float32) * 0.05
    b = jax.random.normal(k_b, (dim,), dtype=jnp.float32) * 0.05

    norm_emb, msg = hgbcn4_forward(user_emb, item_emb, hyper_graph, W, b,
                                   tu=128, ti=128)
    jax.block_until_ready((norm_emb, msg))

    norm_ref, msg_ref = hgbcn4_reference(user_emb, item_emb, hyper_graph, W, b)
    assert msg.shape == msg_ref.shape and norm_emb.shape == norm_ref.shape
    assert jnp.allclose(msg, msg_ref, atol=1e-3, rtol=1e-3), (
        float(jnp.max(jnp.abs(msg - msg_ref))))
    assert jnp.allclose(norm_emb, norm_ref, atol=1e-3, rtol=1e-3), (
        float(jnp.max(jnp.abs(norm_emb - norm_ref))))

    print("KERNEL_OK")
</pallas_src>

<mosaic_0001>
module attributes {stable_mosaic.version = 11 : i64} {
  func.func @_msg_kernel(%arg0: i32, %arg1: i32, %arg2: memref<128x128xbf16, #tpu.memory_space<vmem>>, %arg3: memref<128x128xf32, #tpu.memory_space<vmem>>, %arg4: memref<128x128xf32, #tpu.memory_space<vmem>>, %arg5: memref<128x128xf32, #tpu.memory_space<vmem>>, %arg6: memref<128x128xf32, #tpu.memory_space<vmem>>, %arg7: memref<1x128xf32, #tpu.memory_space<vmem>>, %arg8: memref<128x128xf32, #tpu.memory_space<vmem>>, %arg9: memref<128x128xf32, #tpu.memory_space<vmem>>) attributes {dimension_semantics = [#tpu.dimension_semantics<parallel>, #tpu.dimension_semantics<arbitrary>], iteration_bounds = array<i64: 3, 2>, scalar_prefetch = 0 : i64, scratch_operands = 1 : i64, tpu.core_type = #tpu.core_type<tc>, window_params = [{transform_indices = @transform_0, window_bounds = array<i64: 128, 128>}, {transform_indices = @transform_1, window_bounds = array<i64: 128, 128>}, {transform_indices = @transform_2, window_bounds = array<i64: 128, 128>}, {pipeline_mode = #tpu.pipeline_mode<synchronous>, transform_indices = @transform_3, window_bounds = array<i64: 128, 128>}, {pipeline_mode = #tpu.pipeline_mode<synchronous>, transform_indices = @transform_4, window_bounds = array<i64: 128, 128>}, {pipeline_mode = #tpu.pipeline_mode<synchronous>, transform_indices = @transform_5, window_bounds = array<i64: 1, 128>}, {transform_indices = @transform_6, window_bounds = array<i64: 128, 128>}]} {
    %c0_i32 = arith.constant 0 : i32
    %0 = arith.cmpi eq, %arg1, %c0_i32 : i32
    %1 = arith.extui %0 : i1 to i32
    %c0_i32_0 = arith.constant 0 : i32
    %2 = arith.cmpi ne, %1, %c0_i32_0 : i32
    scf.if %2 {
      %cst_9 = arith.constant 0.000000e+00 : f32
      %13 = vector.broadcast %cst_9 : f32 to vector<128x128xf32>
      %c0_10 = arith.constant 0 : index
      %c0_11 = arith.constant 0 : index
      %14 = vector.load %arg9[%c0_10, %c0_11] : memref<128x128xf32, #tpu.memory_space<vmem>>, vector<128x128xf32>
      tpu.vector_store %arg9[%c0_10, %c0_11], %13 {strides = array<i32>} : memref<128x128xf32, #tpu.memory_space<vmem>>, vector<128x128xf32>,
    } else {
    }
    %c0 = arith.constant 0 : index
    %c0_1 = arith.constant 0 : index
    %3 = vector.load %arg9[%c0, %c0_1] : memref<128x128xf32, #tpu.memory_space<vmem>>, vector<128x128xf32>
    %c0_2 = arith.constant 0 : index
    %c0_3 = arith.constant 0 : index
    %4 = vector.load %arg2[%c0_2, %c0_3] : memref<128x128xbf16, #tpu.memory_space<vmem>>, vector<128x128xbf16>
    %5 = arith.extf %4 : vector<128x128xbf16> to vector<128x128xf32>
    %c0_4 = arith.constant 0 : index
    %c0_5 = arith.constant 0 : index
    %6 = vector.load %arg3[%c0_4, %c0_5] : memref<128x128xf32, #tpu.memory_space<vmem>>, vector<128x128xf32>
    %cst = arith.constant dense<0.000000e+00> : vector<128x128xf32>
    %7 = tpu.matmul %5, %6, %cst {dimension_numbers = #tpu.dot_dimension_numbers<[1], [0], [0], [1], [0, 0, 1, 1], [], []>} : vector<128x128xf32>, vector<128x128xf32>, vector<128x128xf32> -> vector<128x128xf32>
    %8 = arith.addf %3, %7 : vector<128x128xf32>
    %c0_6 = arith.constant 0 : index
    %c0_7 = arith.constant 0 : index
    %9 = vector.load %arg9[%c0_6, %c0_7] : memref<128x128xf32, #tpu.memory_space<vmem>>, vector<128x128xf32>
    tpu.vector_store %arg9[%c0_6, %c0_7], %8 {strides = array<i32>} : memref<128x128xf32, #tpu.memory_space<vmem>>, vector<128x128xf32>,
    %c1_i32 = arith.constant 1 : i32
    %10 = arith.cmpi eq, %arg1, %c1_i32 : i32
    %11 = arith.extui %10 : i1 to i32
    %c0_i32_8 = arith.constant 0 : i32
    %12 = arith.cmpi ne, %11, %c0_i32_8 : i32
    scf.if %12 {
      %c0_9 = arith.constant 0 : index
      %c0_10 = arith.constant 0 : index
      %13 = vector.load %arg9[%c0_9, %c0_10] : memref<128x128xf32, #tpu.memory_space<vmem>>, vector<128x128xf32>
      %c0_11 = arith.constant 0 : index
      %c0_12 = arith.constant 0 : index
      %14 = vector.load %arg4[%c0_11, %c0_12] : memref<128x128xf32, #tpu.memory_space<vmem>>, vector<128x128xf32>
      %15 = arith.mulf %13, %14 : vector<128x128xf32>
      %c0_13 = arith.constant 0 : index
      %c0_14 = arith.constant 0 : index
      %16 = vector.load %arg5[%c0_13, %c0_14] : memref<128x128xf32, #tpu.memory_space<vmem>>, vector<128x128xf32>
      %cst_15 = arith.constant dense<0.000000e+00> : vector<128x128xf32>
      %17 = tpu.matmul %13, %16, %cst_15 {dimension_numbers = #tpu.dot_dimension_numbers<[1], [0], [0], [1], [0, 0, 1, 1], [], []>} : vector<128x128xf32>, vector<128x128xf32>, vector<128x128xf32> -> vector<128x128xf32>
      %c0_16 = arith.constant 0 : index
      %c0_17 = arith.constant 0 : index
      %18 = vector.load %arg6[%c0_16, %c0_17] : memref<128x128xf32, #tpu.memory_space<vmem>>, vector<128x128xf32>
      %cst_18 = arith.constant dense<0.000000e+00> : vector<128x128xf32>
      %19 = tpu.matmul %15, %18, %cst_18 {dimension_numbers = #tpu.dot_dimension_numbers<[1], [0], [0], [1], [0, 0, 1, 1], [], []>} : vector<128x128xf32>, vector<128x128xf32>, vector<128x128xf32> -> vector<128x128xf32>
      %20 = arith.addf %17, %19 : vector<128x128xf32>
      %c0_19 = arith.constant 0 : index
      %c0_20 = arith.constant 0 : index
      %21 = vector.load %arg7[%c0_19, %c0_20] : memref<1x128xf32, #tpu.memory_space<vmem>>, vector<1x128xf32>
      %22 = vector.broadcast %21 : vector<1x128xf32> to vector<128x128xf32>
      %23 = arith.addf %20, %22 : vector<128x128xf32>
      %c0_21 = arith.constant 0 : index
      %c0_22 = arith.constant 0 : index
      %24 = vector.load %arg8[%c0_21, %c0_22] : memref<128x128xf32, #tpu.memory_space<vmem>>, vector<128x128xf32>
      tpu.vector_store %arg8[%c0_21, %c0_22], %23 {strides = array<i32>} : memref<128x128xf32, #tpu.memory_space<vmem>>, vector<128x128xf32>,
    } else {
    }
    return
  }
  func.func @transform_0(%arg0: i32, %arg1: i32) -> (i32, i32) {
    %c0_i32 = arith.constant 0 : i32
    return %arg0, %arg1 : i32, i32
  }
  func.func @transform_1(%arg0: i32, %arg1: i32) -> (i32, i32) {
    %c0_i32 = arith.constant 0 : i32
    %c0_i32_0 = arith.constant 0 : i32
    return %arg1, %c0_i32 : i32, i32
  }
  func.func @transform_2(%arg0: i32, %arg1: i32) -> (i32, i32) {
    %c0_i32 = arith.constant 0 : i32
    %c0_i32_0 = arith.constant 0 : i32
    return %arg0, %c0_i32 : i32, i32
  }
  func.func @transform_3(%arg0: i32, %arg1: i32) -> (i32, i32) {
    %c0_i32 = arith.constant 0 : i32
    %c0_i32_0 = arith.constant 0 : i32
    %c0_i32_1 = arith.constant 0 : i32
    return %c0_i32, %c0_i32_0 : i32, i32
  }
  func.func @transform_4(%arg0: i32, %arg1: i32) -> (i32, i32) {
    %c0_i32 = arith.constant 0 : i32
    %c0_i32_0 = arith.constant 0 : i32
    %c0_i32_1 = arith.constant 0 : i32
    return %c0_i32, %c0_i32_0 : i32, i32
  }
  func.func @transform_5(%arg0: i32, %arg1: i32) -> (i32, i32) {
    %c0_i32 = arith.constant 0 : i32
    %c0_i32_0 = arith.constant 0 : i32
    %c0_i32_1 = arith.constant 0 : i32
    return %c0_i32, %c0_i32_0 : i32, i32
  }
  func.func @transform_6(%arg0: i32, %arg1: i32) -> (i32, i32) {
    %c0_i32 = arith.constant 0 : i32
    %c0_i32_0 = arith.constant 0 : i32
    return %arg0, %c0_i32 : i32, i32
  }
}

</mosaic_0001>

<bundles_post_ra>
// kernel: tpu_custom_call.1
= control target key start
LH: loop header
LB: loop body
LE: loop exit
PB: predicated region body
PF: predicated region fallthrough
CT: control target
= control target key end

     0   :  { %s2082_s0 = inlined_call_operand.hbm [shape: bf16[384,256], index: 0, kind: input, shape index: {}]   ;;  %s2083_s1 = inlined_call_operand.hbm [shape: f32[256,128], index: 1, kind: input, shape index: {}]   ;;  %s2084_s2 = inlined_call_operand.hbm [shape: f32[384,128], index: 2, kind: input, shape index: {}]   ;;  %s2085_s3 = inlined_call_operand.hbm [shape: f32[128,128], index: 3, kind: input, shape index: {}]   ;;  %s2086_s4 = inlined_call_operand.hbm [shape: f32[128,128], index: 4, kind: input, shape index: {}]   ;;  %s2087_s5 = inlined_call_operand.vmem [shape: f32[1,128], index: 5, kind: input, shape index: {}]   ;;  %s2088_s6 = inlined_call_operand.hbm [shape: f32[384,128], index: 6, kind: output, shape index: {}]  }
   0x1   :  { %2098 = sst [smem:[#allocation25_spill]] %s2082_s0 }
   0x2   :  { %2099 = sst [smem:[#allocation26_spill]] %s2083_s1 }
   0x3   :  { %2100 = sst [smem:[#allocation27_spill]] %s2085_s3 }
   0x4   :  { %2101 = sst [smem:[#allocation28_spill]] %s2086_s4 }
   0x5   :  { %2102 = sst [smem:[#allocation29_spill]] %s2087_s5 }
   0x6   :  { %2103 = sst [smem:[#allocation30_spill]] %s2088_s6 }
   0x7   :  { %11 = vsyncpa [#allocation4], 0 }
   0x8   :  { %13 = vsyncpa [#allocation4 + $0x1], 0 }
   0x9   :  { %14 = vsyncpa [#allocation7], 0 }
   0xa   :  { %16 = vsyncpa [#allocation7 + $0x1], 0 }
   0xb   :  { %17 = vsyncpa [#allocation10], 0 }
   0xc   :  { %18 = vsyncpa [#allocation5], 0 }
   0xd   :  { %20 = vsyncpa [#allocation5 + $0x1], 0  ;;  %s1673_s21 = smov 0   ;;  %s1675_s22 = smov 0  }
   0xe   :  { %s1677_s23 = smov 0   ;;  %s1679_s24 = smov 0  }
   0xf   :  { %s1681_s25 = smov 0   ;;  %s1683_s26 = smov 0  }
  0x10   :  { %s1685_s27 = smov 0   ;;  %s1687_s28 = smov 0  }
  0x11   :  { %s1689_s29 = smov 0   ;;  %s1691_s30 = smov 0  }
  0x12   :  { %s1693_s7 = smov 0   ;;  %s1695_s8 = smov 0  }
  0x13   :  { %s1697_s9 = smov 0   ;;  %s1699_s10 = smov 0  }
  0x14 LB: > { %2104 = sst [smem:[#allocation18_spill]] %s1591_s25  ;;  %s1744_s11 = sadd.s32 4294967295, %s1627_s10   ;;  %s1627_s10 = sphi %s1699_s10, %s26_s10   ;;  %s1623_s9 = sphi %s1697_s9, %s2150_s9   ;;  %s1619_s8 = sphi %s1695_s8, %s2149_s8   ;;  %s1615_s7 = sphi %s1693_s7, %s2148_s7   ;;  %s1611_s30 = sphi %s1691_s30, %s2147_s30   ;;  %s1607_s29 = sphi %s1689_s29, %s2146_s29   ;;  %s1603_s28 = sphi %s1687_s28, %s2145_s28   ;;  %s1599_s27 = sphi %s1685_s27, %s2144_s27   ;;  %s1595_s26 = sphi %s1683_s26, %s2143_s26   ;;  %s1591_s25 = sphi %s1681_s25, %s2142_s25   ;;  %s1587_s24 = sphi %s1679_s24, %s2133_s24   ;;  %s1583_s23 = sphi %s1677_s23, %s2141_s23   ;;  %s1579_s22 = sphi %s1675_s22, %s2140_s22   ;;  %s1575_s21 = sphi %s1673_s21, %s2139_s21  }
  0x15   : > { %2105 = sst [smem:[#allocation19_spill]] %s1611_s30  ;;  %p1003_p0 = scmp.ge.s32.totalorder %s1627_s10, 1 }
  0x16   : > { %2106 = sst [smem:[#allocation20_spill]] %s1615_s7  ;;  %p61_p1 = scmp.eq.s32.totalorder %s1744_s11, 0 }
  0x17   : > { %2107 = sst [smem:[#allocation21_spill]] %s1619_s8  ;;  %p199_p2 = scmp.eq.s32.totalorder %s1744_s11, 5 }
  0x18   : > { %p212_p3 = scmp.lt.s32.totalorder %s1627_s10, 7  ;;  %s2108_s3 = sld [smem:[#allocation27_spill]] }
  0x19   : > { %s1629_s16 = smov [#allocation9]   ;;  %s2089_s19 = smov 128  }
  0x1a   : > { %p1753_p4 = pnand %p1003_p0, %p212_p3  ;;  %s225_s17 = sshll.u32 %s1629_s16, 4  ;;  %s226_s17 = int_to_ptr.vmem [resolvable:$true] %s225_s17 }
  0x1b   : > { %s2091_s20 = smov 8   ;;  %s35_s12 = sadd.s32 1, %s1619_s8 }
  0x1c   : > { %p1170_p5 = pneg %p1753_p4  ;;  %s38_s13 = sadd.s32 1, %s1623_s9 }
  0x1d   : > { %p36_p7 = scmp.ge.s32.totalorder %s35_s12, 2  ;;  %p55_p8 = scmp.eq.s32.totalorder %s1627_s10, 0 }
  0x1e   : > { %s223_s14 = sshll.u32 %s2108_s3, 4  ;;  %p1761_p6 = pnand %p1170_p5, %p61_p1  ;;  %s224_s14 = int_to_ptr.hbm [resolvable:$true] %s223_s14 }
  0x1f   : > { %s73_s16 = sadd.s32 1, %s1595_s26  ;;  %p80_p9 = scmp.ne.s32.totalorder %s1595_s26, %s1591_s25 }
  0x20   : > { %1173 = dma.hbm_to_vmem [thread:$0]  (!%p1761_p6), %s224_s14, 2048, %s226_s17, [#allocation10], %s2089_s19, %s2089_s19, %s2091_s20  }
  0x21   : > { %s2152_s12 = smov (%p36_p7, %s35_s12), 0  ;;  %s2154_s13 = smov (!%p36_p7, %s38_s13), %s1623_s9 }
  0x22   : > { %2111 = sst [smem:[#allocation22_spill]] %s2152_s12  ;;  %s43_s3 = ssub.s32 %s1619_s8, %s2152_s12 }
  0x23   : > { %p1783_p10 = por %p80_p9, %p55_p8  ;;  %p40_p11 = scmp.ge.s32.totalorder %s2154_s13, 3 }
  0x24   : > { %p71_p12 = scmp.eq.s32.totalorder %s43_s3, 0  ;;  %p86_p13 = scmp.ne.s32.totalorder %s1591_s25, %s1587_s24 }
  0x25   : > { %p1193_p0 = scmp.lt.s32.totalorder %s1627_s10, 6  ;;  %s2156_s13 = smov (%p40_p11, %s2154_s13), 0 }
  0x26   : > { %2113 = sst [smem:[#allocation23_spill]] %s2156_s13  ;;  %s1797_s19 = ssub.s32 %s1623_s9, %s2156_s13 }
  0x27   : > { %s1793_s17 = scalar_select %p71_p12, %s1595_s26, %s73_s16  }
  0x28   : > { %p1801_p3 = por %p86_p13, %p61_p1  ;;  %s44_s12 = sor.u32 %s43_s3, %s1797_s19 }
  0x29   : > { %2114 = sst [smem:[#allocation24_spill]] %s1793_s17  ;;  %p97_p5 = scmp.eq.s32.totalorder %s1797_s19, 0 }
  0x2a   : > { %p1807_p7 = scmp.eq.s32.totalorder %s44_s12, 0  ;;  %s280_s6 = sand.u32 1, %s1627_s10  }
  0x2b   : > { %s282_s16 = sand.u32 1, %s1595_s26   ;;  %s1032_s7 = sshll.u32 %s1619_s8, 7 }
  0x2c   : > { %s1011_s17 = sshll.u32 %s282_s16, 7  ;;  %s2117_s1 = sld [smem:[#allocation26_spill]] }
  0x2d   : > { %s284_s3 = scalar_lea.vmem [#allocation6], %s1011_s17  ;;  %p1181_p9 = pnand %p1193_p0, %p1783_p10 }
  0x2e   : > { %s292_s12 = sshll.u32 %s284_s3, 4  ;;  %s2118_s4 = sld [smem:[#allocation28_spill]]  ;;  %s293_s12 = int_to_ptr.vmem [resolvable:$true] %s292_s12 }
  0x2f   : > { %s1824_s16 = scalar_lea.sflag [#allocation7], %s280_s6  ;;  %s2119_s3 = smov 8  }
  0x30   : > { %s47_s14 = sadd.s32 1, %s1607_s29  ;;  %p54_p10 = scmp.ne.s32.totalorder %s1607_s29, %s1603_s28 }
  0x31   : > { %s1839_s5 = scalar_select %p1807_p7, %s1607_s29, %s47_s14  }
  0x32   : > { %s289_s30 = scalar_lea.hbm %s2117_s1, %s1032_s7  ;;  %s2120_s1 = smov 128  }
  0x33   : > { %s290_s25 = sshll.u32 %s289_s30, 4  ;;  %s1632_s30 = smov [#allocation11]   ;;  %s291_s25 = int_to_ptr.hbm [resolvable:$true] %s290_s25 }
  0x34   : > { %s237_s7 = sshll.u32 %s2118_s4, 4  ;;  %s239_s17 = sshll.u32 %s1632_s30, 4  ;;  %s238_s7 = int_to_ptr.hbm [resolvable:$true] %s237_s7  ;;  %s240_s17 = int_to_ptr.vmem [resolvable:$true] %s239_s17 }
  0x35   : > { %1183 = dma.hbm_to_vmem [thread:$0]  (!%p1181_p9), %s291_s25, 2048, %s293_s12, %s1824_s16, %s2120_s1, %s2120_s1, %s2119_s3  }
  0x36   : > { %1176 = dma.hbm_to_vmem [thread:$0]  (!%p1761_p6), %s238_s7, 2048, %s240_s17, [#allocation10], %s2120_s1, %s2120_s1, %s2119_s3  }
  0x37   : > { %p60_p11 = scmp.ne.s32.totalorder %s1603_s28, %s1599_s27  ;;  %s256_s6 = sand.u32 1, %s1607_s29  }
  0x38   : > { %s1031_s13 = sshll.u32 %s1623_s9, 5  ;;  %p56_p12 = por %p55_p8, %p54_p10 }
  0x39   : > { %p1851_p13 = por %p61_p1, %p60_p11  ;;  %s1007_s18 = sshll.u32 %s256_s6, 6 }
  0x3a   : > { %s265_s24 = sadd.s32 %s1619_s8, %s1031_s13  ;;  %s260_s27 = scalar_lea.vmem [#allocation3], %s1007_s18 }
  0x3b   : > { %s1010_s12 = sshll.u32 %s265_s24, 2  ;;  %s270_s7 = sshll.u32 %s260_s27, 4  ;;  %s271_s7 = int_to_ptr.vmem [resolvable:$true] %s270_s7 }
  0x3c   : > { %s2122_s0 = sld [smem:[#allocation25_spill]]  ;;  %p1178_p6 = pnand %p1193_p0, %p56_p12 }
  0x3d   : > { %s257_s13 = scalar_lea.sflag [#allocation4], %s256_s6  ;;  %s1633_s24 = smov 64  }
  0x3e   : > { %s1634_s8 = smov 4   ;;  %s1002_s18 = sadd.s32 4294967294, %s1627_s10  }
  0x3f   : > { %s99_s27 = sadd.s32 1, %s1583_s23  ;;  %p106_p7 = scmp.ne.s32.totalorder %s1583_s23, %s1579_s22 }
  0x40   : > { %s1867_s30 = scalar_select %p97_p5, %s1583_s23, %s99_s27  }
  0x41   : > { %p112_p9 = scmp.ne.s32.totalorder %s1579_s22, %s1575_s21  ;;  %p205_p10 = scmp.eq.s32.totalorder %s1002_s18, 5 }
  0x42   : > { %s267_s14 = scalar_lea.hbm %s2122_s0, %s1010_s12  ;;  %s304_s12 = sand.u32 1, %s1583_s23  }
  0x43   : > { %s268_s4 = sshll.u32 %s267_s14, 4  ;;  %p108_p11 = por %p106_p7, %p55_p8  ;;  %s269_s4 = int_to_ptr.hbm [resolvable:$true] %s268_s4 }
  0x44   : > { %1180 = dma.hbm_to_vmem [thread:$0]  (!%p1178_p6), %s269_s4, 1024, %s271_s7, %s257_s13, %s2120_s1, %s1633_s24, %s1634_s8  }
  0x45   : > { %p1878_p12 = por %p112_p9, %p61_p1  ;;  %p1884_p6 = por %p199_p2, %p106_p7 }
  0x46   : > { %p1888_p5 = por %p205_p10, %p112_p9  ;;  %s1014_s19 = sshll.u32 %s304_s12, 7 }
  0x47   : > { %s1033_s7 = sshll.u32 %s1623_s9, 7  ;;  %s306_s18 = scalar_lea.vmem [#allocation8], %s1014_s19 }
  0x48   : > { %s311_s13 = scalar_lea.hbm %s2084_s2, %s1033_s7  ;;  %s314_s27 = sshll.u32 %s306_s18, 4  ;;  %s315_s27 = int_to_ptr.vmem [resolvable:$true] %s314_s27 }
  0x49   : > { %s312_s24 = sshll.u32 %s311_s13, 4  ;;  %p1184_p2 = pnand %p1193_p0, %p108_p11  ;;  %s313_s24 = int_to_ptr.hbm [resolvable:$true] %s312_s24 }
  0x4a   : > { %326 = sbr.rel (%p1753_p4) target bundleno = 566 (0x236), region = 44  ;;  %s328_s12 = sand.u32 (!%p1753_p4), 1, %s1603_s28  }
  0x4b   : > { %1186 = dma.hbm_to_vmem [thread:$0]  (!%p1184_p2), %s313_s24, 2048, %s315_s27, %s1824_s16, %s2120_s1, %s2120_s1, %s2119_s3  }
  0x4c   : > { %s1018_s0 = sshll.u32 (!%p1753_p4), %s328_s12, 6  ;;  %s329_s17 = scalar_lea.sflag (!%p1753_p4), [#allocation4], %s328_s12 }
  0x4d   : > { %s1905_s7 = scalar_lea.vmem (!%p1753_p4), [#allocation3], %s1018_s0 }
  0x4f   : > { %1554 = dma.done.wait (%p1851_p13), %s329_s17, 1024  }
  0x50   : > { %1556 = vsyncadd (%p1851_p13), %s329_s17, 4294966272  ;;  %s2126_s19 = sld [smem:[#allocation18_spill]]  ;;  %s338_s14 = sand.u32 1, %s1744_s11  }
  0x51   : > { %s339_s15 = scalar_lea.sflag [#allocation7], %s338_s14 }
  0x56   : > { %s340_s1 = sand.u32 1, %s2126_s19  }
  0x57   : > { %s1019_s16 = sshll.u32 %s340_s1, 7 }
  0x58   : > { %s1913_s3 = scalar_lea.vmem [#allocation6], %s1019_s16 }
  0x59   : > { %1558 = dma.done.wait (%p1801_p3), %s339_s15, 2048  }
  0x5a   : > { %1560 = vsyncadd (%p1801_p3), %s339_s15, 4294965248  ;;  %s350_s0 = sand.u32 1, %s1579_s22  }
  0x5b   : > { %s1020_s25 = sshll.u32 %s350_s0, 7 }
  0x5c   : > { %s1922_s13 = scalar_lea.vmem [#allocation8], %s1020_s25 }
  0x5d   : > { %1562 = dma.done.wait (%p1878_p12), %s339_s15, 2048  }
  0x5e   : > { %1564 = vsyncadd (%p1878_p12), %s339_s15, 4294965248 }
  0x5f   : > { %1566 = dma.done.wait (%p61_p1), [#allocation10], 4096  }
  0x60   : > { %1568 = vsyncadd (%p61_p1), [#allocation10], 4294963200  ;;  %s1932_s20 = scalar_lea.vmem [#allocation12], %s1020_s25  ;;  %s2127_s24 = sld [smem:[#allocation19_spill]] }
  0x66   : > { %p1024_p4 = scmp.ne.s32.totalorder %s2127_s24, 0 }
  0x68   : > { %409 = sbr.rel (%p1024_p4) target bundleno = 126 (0x7e), region = 68 }
  0x6d   : > { %v1635_v0 = vmov 0.0  }
  0x6e   : > { %410 = vst [vmem:[#allocation2 + $0x30] sm:$0xff] %v1635_v0 }
  0x6f   : > { %411 = vst [vmem:[#allocation2] sm:$0xff] %v1635_v0 }
  0x70   : > { %412 = vst [vmem:[#allocation2 + $0x58] sm:$0xff] %v1635_v0 }
  0x71   : > { %413 = vst [vmem:[#allocation2 + $0x18] sm:$0xff] %v1635_v0 }
  0x72   : > { %414 = vst [vmem:[#allocation2 + $0x50] sm:$0xff] %v1635_v0 }
  0x73   : > { %415 = vst [vmem:[#allocation2 + $0x68] sm:$0xff] %v1635_v0 }
  0x74   : > { %416 = vst [vmem:[#allocation2 + $0x8] sm:$0xff] %v1635_v0 }
  0x75   : > { %417 = vst [vmem:[#allocation2 + $0x48] sm:$0xff] %v1635_v0 }
  0x76   : > { %418 = vst [vmem:[#allocation2 + $0x40] sm:$0xff] %v1635_v0 }
  0x77   : > { %419 = vst [vmem:[#allocation2 + $0x20] sm:$0xff] %v1635_v0 }
  0x78   : > { %420 = vst [vmem:[#allocation2 + $0x10] sm:$0xff] %v1635_v0 }
  0x79   : > { %421 = vst [vmem:[#allocation2 + $0x38] sm:$0xff] %v1635_v0 }
  0x7a   : > { %422 = vst [vmem:[#allocation2 + $0x60] sm:$0xff] %v1635_v0 }
  0x7b   : > { %423 = vst [vmem:[#allocation2 + $0x70] sm:$0xff] %v1635_v0 }
  0x7c   : > { %424 = vst [vmem:[#allocation2 + $0x78] sm:$0xff] %v1635_v0 }
  0x7d   : > { %425 = vst [vmem:[#allocation2 + $0x28] sm:$0xff] %v1635_v0 }
  0x7e PF: > { %v489_v1 = vld [vmem:[%s1913_s3 + $0x78] sm:$0xff]  ;;  %v488_v2 = vld [vmem:[%s1913_s3 + $0x70] sm:$0xff]  ;;  %v487_v3 = vld [vmem:[%s1913_s3 + $0x68] sm:$0xff]  ;;  %s2128_s11 = sld [smem:[#allocation19_spill]] }
  0x7f   : > { %1075 = vmatpush.msra.mxu2 %v489_v1  ;;  %1076 = vmatpush.msra.mxu3 %v489_v1  ;;  %v486_v4 = vld [vmem:[%s1913_s3 + $0x60] sm:$0xff]  ;;  %v485_v5 = vld [vmem:[%s1913_s3 + $0x58] sm:$0xff]  ;;  %v484_v6 = vld [vmem:[%s1913_s3 + $0x50] sm:$0xff] }
  0x80   : > { %490 = vmatpush.msra.mxu0 %v489_v1  ;;  %1074 = vmatpush.msra.mxu1 %v489_v1  ;;  %v483_v7 = vld [vmem:[%s1913_s3 + $0x48] sm:$0xff]  ;;  %v482_v8 = vld [vmem:[%s1913_s3 + $0x40] sm:$0xff]  ;;  %v481_v9 = vld [vmem:[%s1913_s3 + $0x38] sm:$0xff] }
  0x81   : > { %1078 = vmatpush.msra.mxu2 %v488_v2  ;;  %1079 = vmatpush.msra.mxu3 %v488_v2  ;;  %v480_v10 = vld [vmem:[%s1913_s3 + $0x30] sm:$0xff]  ;;  %v479_v11 = vld [vmem:[%s1913_s3 + $0x28] sm:$0xff]  ;;  %v478_v12 = vld [vmem:[%s1913_s3 + $0x20] sm:$0xff] }
  0x82   : > { %491 = vmatpush.msra.mxu0 %v488_v2  ;;  %1077 = vmatpush.msra.mxu1 %v488_v2  ;;  %v477_v13 = vld [vmem:[%s1913_s3 + $0x18] sm:$0xff]  ;;  %v476_v14 = vld [vmem:[%s1913_s3 + $0x10] sm:$0xff]  ;;  %v1070_v15 = vld [vmem:[%s1905_s7 + $0x20] sm:$0xff]  }
  0x83   : > { %1081 = vmatpush.msra.mxu2 %v487_v3  ;;  %1082 = vmatpush.msra.mxu3 %v487_v3  ;;  %v1072_v16 = vld [vmem:[%s1905_s7 + $0x30] sm:$0xff]   ;;  %v475_v17 = vld [vmem:[%s1913_s3 + $0x8] sm:$0xff]  ;;  %v1036_v18 = vld [vmem:[%s1905_s7] sm:$0xff]   ;;  %v1053_v21 = vunpack.c.l.bf16 %v1070_v15  ;;  %v1054_v25 = vunpack.c.h.bf16 %v1070_v15 }
  0x84   : > { %492 = vmatpush.msra.mxu0 %v487_v3  ;;  %1080 = vmatpush.msra.mxu1 %v487_v3  ;;  %v1068_v19 = vld [vmem:[%s1905_s7 + $0x10] sm:$0xff]   ;;  %v474_v20 = vld [vmem:[%s1913_s3] sm:$0xff]  ;;  %v1061_v22 = vunpack.c.l.bf16 %v1072_v16  ;;  %v1037_v23 = vunpack.c.l.bf16 %v1036_v18  ;;  %v1062_v26 = vunpack.c.h.bf16 %v1072_v16  ;;  %v1038_v27 = vunpack.c.h.bf16 %v1036_v18  ;;  %v1071_v29 = vld [vmem:[%s1905_s7 + $0x28] sm:$0xff]   ;;  %p1025_p1 = scmp.ne.s32.totalorder %s2128_s11, 1 }
  0x85   : > { %1084 = vmatpush.msra.mxu2 %v486_v4  ;;  %1085 = vmatpush.msra.mxu3 %v486_v4  ;;  %v1045_v24 = vunpack.c.l.bf16 %v1068_v19  ;;  %v1046_v28 = vunpack.c.h.bf16 %v1068_v19  ;;  %v1073_v30 = vld [vmem:[%s1905_s7 + $0x38] sm:$0xff]   ;;  %v1067_v31 = vld [vmem:[%s1905_s7 + $0x8] sm:$0xff]   ;;  %v1057_v33 = vunpack.c.l.bf16 %v1071_v29  ;;  %v1058_v37 = vunpack.c.h.bf16 %v1071_v29  ;;  %v426_v41 = vld [vmem:[#allocation2 + $0x30] sm:$0xff]  ;;  %s2129_s27 = sld [smem:[#allocation29_spill]] (!%p1025_p1) }
  0x86   : > { %493 = vmatpush.msra.mxu0 %v486_v4  ;;  %1083 = vmatpush.msra.mxu1 %v486_v4  ;;  %v1069_v32 = vld [vmem:[%s1905_s7 + $0x18] sm:$0xff]   ;;  %v1065_v34 = vunpack.c.l.bf16 %v1073_v30  ;;  %v1041_v35 = vunpack.c.l.bf16 %v1067_v31  ;;  %v1066_v38 = vunpack.c.h.bf16 %v1073_v30  ;;  %v1042_v39 = vunpack.c.h.bf16 %v1067_v31  ;;  %v430_v42 = vld [vmem:[#allocation2 + $0x50] sm:$0xff]  ;;  %v434_v47 = vld [vmem:[#allocation2 + $0x40] sm:$0xff] }
  0x87   : > { %1087 = vmatpush.msra.mxu2 %v485_v5  ;;  %1088 = vmatpush.msra.mxu3 %v485_v5  ;;  %v1049_v36 = vunpack.c.l.bf16 %v1069_v32  ;;  %v1050_v40 = vunpack.c.h.bf16 %v1069_v32  ;;  %v438_v48 = vld [vmem:[#allocation2 + $0x60] sm:$0xff]  ;;  %v431_v54 = vld [vmem:[#allocation2 + $0x68] sm:$0xff]  ;;  %v439_v60 = vld [vmem:[#allocation2 + $0x70] sm:$0xff] }
  0x88   : > { %494 = vmatpush.msra.mxu0 %v485_v5  ;;  %1086 = vmatpush.msra.mxu1 %v485_v5  ;;  %v427_v53 = vld [vmem:[#allocation2] sm:$0xff]  ;;  %v428_v1 = vld [vmem:[#allocation2 + $0x58] sm:$0xff]  ;;  %v432_v2 = vld [vmem:[#allocation2 + $0x8] sm:$0xff] }
  0x89   : > { %1090 = vmatpush.msra.mxu2 %v484_v6  ;;  %1091 = vmatpush.msra.mxu3 %v484_v6  ;;  %v435_v59 = vld [vmem:[#allocation2 + $0x20] sm:$0xff]  ;;  %v437_v19 = vld [vmem:[#allocation2 + $0x38] sm:$0xff] }
  0x8a   : > { %495 = vmatpush.msra.mxu0 %v484_v6  ;;  %1089 = vmatpush.msra.mxu1 %v484_v6 }
  0x8b   : > { %1093 = vmatpush.msra.mxu2 %v483_v7  ;;  %1094 = vmatpush.msra.mxu3 %v483_v7 }
  0x8c   : > { %496 = vmatpush.msra.mxu0 %v483_v7  ;;  %1092 = vmatpush.msra.mxu1 %v483_v7  ;;  %v436_v7 = vld [vmem:[#allocation2 + $0x10] sm:$0xff] }
  0x8d   : > { %1096 = vmatpush.msra.mxu2 %v482_v8  ;;  %1097 = vmatpush.msra.mxu3 %v482_v8 }
  0x8e   : > { %497 = vmatpush.msra.mxu0 %v482_v8  ;;  %1095 = vmatpush.msra.mxu1 %v482_v8  ;;  %v440_v8 = vld [vmem:[#allocation2 + $0x78] sm:$0xff] }
  0x8f   : > { %1099 = vmatpush.msra.mxu2 %v481_v9  ;;  %1100 = vmatpush.msra.mxu3 %v481_v9 }
  0x90   : > { %498 = vmatpush.msra.mxu0 %v481_v9  ;;  %1098 = vmatpush.msra.mxu1 %v481_v9 }
  0x91   : > { %1102 = vmatpush.msra.mxu2 %v480_v10  ;;  %1103 = vmatpush.msra.mxu3 %v480_v10 }
  0x92   : > { %499 = vmatpush.msra.mxu0 %v480_v10  ;;  %1101 = vmatpush.msra.mxu1 %v480_v10 }
  0x93   : > { %1105 = vmatpush.msra.mxu2 %v479_v11  ;;  %1106 = vmatpush.msra.mxu3 %v479_v11 }
  0x94   : > { %500 = vmatpush.msra.mxu0 %v479_v11  ;;  %1104 = vmatpush.msra.mxu1 %v479_v11 }
  0x95   : > { %1108 = vmatpush.msra.mxu2 %v478_v12  ;;  %1109 = vmatpush.msra.mxu3 %v478_v12 }
  0x96   : > { %501 = vmatpush.msra.mxu0 %v478_v12  ;;  %1107 = vmatpush.msra.mxu1 %v478_v12 }
  0x97   : > { %1111 = vmatpush.msra.mxu2 %v477_v13  ;;  %1112 = vmatpush.msra.mxu3 %v477_v13 }
  0x98   : > { %502 = vmatpush.msra.mxu0 %v477_v13  ;;  %1110 = vmatpush.msra.mxu1 %v477_v13  ;;  %v429_v13 = vld [vmem:[#allocation2 + $0x18] sm:$0xff] }
  0x99   : > { %1114 = vmatpush.msra.mxu2 %v476_v14  ;;  %1115 = vmatpush.msra.mxu3 %v476_v14 }
  0x9a   : > { %503 = vmatpush.msra.mxu0 %v476_v14  ;;  %1113 = vmatpush.msra.mxu1 %v476_v14  ;;  %v433_v14 = vld [vmem:[#allocation2 + $0x48] sm:$0xff] }
  0x9b   : > { %1117 = vmatpush.msra.mxu2 %v475_v17  ;;  %1118 = vmatpush.msra.mxu3 %v475_v17 }
  0x9c   : > { %504 = vmatpush.msra.mxu0 %v475_v17  ;;  %1116 = vmatpush.msra.mxu1 %v475_v17 }
  0x9d   : > { %1120 = vmatpush.msra.mxu2 %v474_v20  ;;  %1121 = vmatpush.msra.mxu3 %v474_v20 }
  0x9e   : > { %530 = vmatmul.f32.vlgmr.msra.gmra.mxu2 %v1053_v21  ;;  %542 = vmatmul.f32.vlgmr.msra.gmra.mxu3 %v1061_v22 }
  0x9f   : > { %505 = vmatpush.msra.mxu0 %v474_v20  ;;  %1119 = vmatpush.msra.mxu1 %v474_v20  ;;  %v441_v20 = vld [vmem:[#allocation2 + $0x28] sm:$0xff] }
  0xa0   : > { %506 = vmatmul.f32.vlgmr.msra.gmra.mxu0 %v1037_v23  ;;  %518 = vmatmul.f32.vlgmr.msra.gmra.mxu1 %v1045_v24 }
  0xa6   : > { %533 = vmatmul.f32.gmra.mxu2 %v1054_v25  ;;  %545 = vmatmul.f32.gmra.mxu3 %v1062_v26 }
  0xa8   : > { %509 = vmatmul.f32.gmra.mxu0 %v1038_v27  ;;  %521 = vmatmul.f32.gmra.mxu1 %v1046_v28 }
  0xae   : > { %536 = vmatmul.f32.gmra.mxu2 %v1057_v33  ;;  %548 = vmatmul.f32.gmra.mxu3 %v1065_v34 }
  0xb0   : > { %512 = vmatmul.f32.gmra.mxu0 %v1041_v35  ;;  %524 = vmatmul.f32.gmra.mxu1 %v1049_v36 }
  0xb6   : > { %539 = vmatmul.f32.gmra.mxu2 %v1058_v37  ;;  %551 = vmatmul.f32.gmra.mxu3 %v1066_v38 }
  0xb8   : > { %515 = vmatmul.f32.gmra.mxu0 %v1042_v39  ;;  %527 = vmatmul.f32.gmra.mxu1 %v1050_v40 }
 0x11d   : > { %v507_v43 = vpop.f32.mrf.mxu0  ;;  %v519_v44 = vpop.f32.mrf.mxu1 }
 0x11e   : > { %v555_v45 = vadd.f32 %v507_v43, %v426_v41  ;;  %v559_v46 = vadd.f32 %v519_v44, %v430_v42 }
 0x120   : > { %571 = vst [vmem:[#allocation2 + $0x30] sm:$0xff] %v555_v45 }
 0x121   : > { %575 = vst [vmem:[#allocation2 + $0x50] sm:$0xff] %v559_v46  ;;  %v531_v49 = vpop.f32.mrf.mxu2  ;;  %v543_v50 = vpop.f32.mrf.mxu3 }
 0x122   : > { %v563_v51 = vadd.f32 %v531_v49, %v434_v47  ;;  %v567_v52 = vadd.f32 %v543_v50, %v438_v48 }
 0x124   : > { %579 = vst [vmem:[#allocation2 + $0x40] sm:$0xff] %v563_v51 }
 0x125   : > { %583 = vst [vmem:[#allocation2 + $0x60] sm:$0xff] %v567_v52  ;;  %v510_v55 = vpop.f32.mrf.mxu0  ;;  %v522_v56 = vpop.f32.mrf.mxu1 }
 0x126   : > { %v556_v57 = vadd.f32 %v510_v55, %v427_v53  ;;  %v560_v58 = vadd.f32 %v522_v56, %v431_v54 }
 0x128   : > { %572 = vst [vmem:[#allocation2] sm:$0xff] %v556_v57 }
 0x129   : > { %576 = vst [vmem:[#allocation2 + $0x68] sm:$0xff] %v560_v58  ;;  %v534_v61 = vpop.f32.mrf.mxu2  ;;  %v546_v62 = vpop.f32.mrf.mxu3 }
 0x12a   : > { %v564_v63 = vadd.f32 %v534_v61, %v435_v59  ;;  %v568_v0 = vadd.f32 %v546_v62, %v439_v60 }
 0x12c   : > { %580 = vst [vmem:[#allocation2 + $0x20] sm:$0xff] %v564_v63 }
 0x12d   : > { %584 = vst [vmem:[#allocation2 + $0x70] sm:$0xff] %v568_v0  ;;  %v513_v3 = vpop.f32.mrf.mxu0  ;;  %v525_v4 = vpop.f32.mrf.mxu1 }
 0x12e   : > { %v557_v5 = vadd.f32 %v513_v3, %v428_v1  ;;  %v561_v6 = vadd.f32 %v525_v4, %v432_v2 }
 0x130   : > { %573 = vst [vmem:[#allocation2 + $0x58] sm:$0xff] %v557_v5 }
 0x131   : > { %577 = vst [vmem:[#allocation2 + $0x8] sm:$0xff] %v561_v6  ;;  %v537_v9 = vpop.f32.mrf.mxu2  ;;  %v549_v10 = vpop.f32.mrf.mxu3 }
 0x132   : > { %v565_v11 = vadd.f32 %v537_v9, %v436_v7  ;;  %v569_v12 = vadd.f32 %v549_v10, %v440_v8 }
 0x134   : > { %581 = vst [vmem:[#allocation2 + $0x10] sm:$0xff] %v565_v11 }
 0x135   : > { %585 = vst [vmem:[#allocation2 + $0x78] sm:$0xff] %v569_v12  ;;  %v516_v15 = vpop.f32.mrf.mxu0  ;;  %v528_v16 = vpop.f32.mrf.mxu1 }
 0x136   : > { %v558_v17 = vadd.f32 %v516_v15, %v429_v13  ;;  %v562_v18 = vadd.f32 %v528_v16, %v433_v14 }
 0x138   : > { %574 = vst [vmem:[#allocation2 + $0x18] sm:$0xff] %v558_v17 }
 0x139   : > { %578 = vst [vmem:[#allocation2 + $0x48] sm:$0xff] %v562_v18  ;;  %v540_v21 = vpop.f32.mrf.mxu2  ;;  %v552_v22 = vpop.f32.mrf.mxu3  ;;  %590 = sbr.rel (%p1025_p1) target bundleno = 544 (0x220), region = 72 }
 0x13a   : > { %v566_v23 = vadd.f32 %v540_v21, %v437_v19  ;;  %v570_v24 = vadd.f32 %v552_v22, %v441_v20 }
 0x13c   : > { %582 = vst [vmem:[#allocation2 + $0x38] sm:$0xff] %v566_v23 }
 0x13d   : > { %586 = vst [vmem:[#allocation2 + $0x28] sm:$0xff] %v570_v24 }
 0x13e   : > { %v670_v25 = vld [vmem:[#allocation11 + $0x78] sm:$0xff]  ;;  %v669_v27 = vld [vmem:[#allocation11 + $0x70] sm:$0xff]  ;;  %v668_v29 = vld [vmem:[#allocation11 + $0x68] sm:$0xff] }
 0x13f   : > { %v654_v26 = vld [vmem:[#allocation9 + $0x78] sm:$0xff]  ;;  %1122 = vmatpush.msra.mxu2 %v670_v25  ;;  %v653_v28 = vld [vmem:[#allocation9 + $0x70] sm:$0xff]  ;;  %v652_v30 = vld [vmem:[#allocation9 + $0x68] sm:$0xff]  ;;  %671 = vmatpush.msra.mxu0 %v670_v25 }
 0x140   : > { %1138 = vmatpush.msra.mxu3 %v654_v26  ;;  %736 = vmatpush.msra.mxu1 %v654_v26  ;;  %v667_v31 = vld [vmem:[#allocation11 + $0x60] sm:$0xff]  ;;  %v666_v33 = vld [vmem:[#allocation11 + $0x58] sm:$0xff]  ;;  %v665_v35 = vld [vmem:[#allocation11 + $0x50] sm:$0xff] }
 0x141   : > { %1123 = vmatpush.msra.mxu2 %v669_v27  ;;  %v651_v32 = vld [vmem:[#allocation9 + $0x60] sm:$0xff]  ;;  %672 = vmatpush.msra.mxu0 %v669_v27  ;;  %v650_v34 = vld [vmem:[#allocation9 + $0x58] sm:$0xff]  ;;  %v649_v36 = vld [vmem:[#allocation9 + $0x50] sm:$0xff] }
 0x142   : > { %1139 = vmatpush.msra.mxu3 %v653_v28  ;;  %737 = vmatpush.msra.mxu1 %v653_v28  ;;  %v664_v37 = vld [vmem:[#allocation11 + $0x48] sm:$0xff]  ;;  %v663_v39 = vld [vmem:[#allocation11 + $0x40] sm:$0xff]  ;;  %v662_v41 = vld [vmem:[#allocation11 + $0x38] sm:$0xff] }
 0x143   : > { %1124 = vmatpush.msra.mxu2 %v668_v29  ;;  %673 = vmatpush.msra.mxu0 %v668_v29  ;;  %v648_v38 = vld [vmem:[#allocation9 + $0x48] sm:$0xff]  ;;  %v647_v40 = vld [vmem:[#allocation9 + $0x40] sm:$0xff]  ;;  %v646_v42 = vld [vmem:[#allocation9 + $0x38] sm:$0xff] }
 0x144   : > { %1140 = vmatpush.msra.mxu3 %v652_v30  ;;  %738 = vmatpush.msra.mxu1 %v652_v30  ;;  %v661_v43 = vld [vmem:[#allocation11 + $0x30] sm:$0xff]  ;;  %v660_v45 = vld [vmem:[#allocation11 + $0x28] sm:$0xff]  ;;  %v659_v47 = vld [vmem:[#allocation11 + $0x20] sm:$0xff] }
 0x145   : > { %1125 = vmatpush.msra.mxu2 %v667_v31  ;;  %674 = vmatpush.msra.mxu0 %v667_v31  ;;  %v645_v44 = vld [vmem:[#allocation9 + $0x30] sm:$0xff]  ;;  %v644_v46 = vld [vmem:[#allocation9 + $0x28] sm:$0xff]  ;;  %v643_v48 = vld [vmem:[#allocation9 + $0x20] sm:$0xff] }
 0x146   : > { %1141 = vmatpush.msra.mxu3 %v651_v32  ;;  %739 = vmatpush.msra.mxu1 %v651_v32  ;;  %v658_v49 = vld [vmem:[#allocation11 + $0x18] sm:$0xff]  ;;  %v657_v51 = vld [vmem:[#allocation11 + $0x10] sm:$0xff]  ;;  %v599_v53 = vld [vmem:[#allocation2 + $0x40] sm:$0xff] }
 0x147   : > { %1126 = vmatpush.msra.mxu2 %v666_v33  ;;  %675 = vmatpush.msra.mxu0 %v666_v33  ;;  %v642_v50 = vld [vmem:[#allocation9 + $0x18] sm:$0xff]  ;;  %v641_v52 = vld [vmem:[#allocation9 + $0x10] sm:$0xff]  ;;  %v615_v54 = vld [vmem:[%s1922_s13 + $0x40] sm:$0xff] }
 0x148   : > { %1142 = vmatpush.msra.mxu3 %v650_v34  ;;  %740 = vmatpush.msra.mxu1 %v650_v34  ;;  %v656_v55 = vld [vmem:[#allocation11 + $0x8] sm:$0xff]  ;;  %v591_v57 = vld [vmem:[#allocation2 + $0x30] sm:$0xff]  ;;  %v607_v58 = vld [vmem:[%s1922_s13] sm:$0xff]  ;;  %v631_v61 = vmul.f32 %v615_v54, %v599_v53 }
 0x149   : > { %1127 = vmatpush.msra.mxu2 %v665_v35  ;;  %676 = vmatpush.msra.mxu0 %v665_v35  ;;  %v640_v56 = vld [vmem:[#allocation9 + $0x8] sm:$0xff]  ;;  %v655_v59 = vld [vmem:[#allocation11] sm:$0xff]  ;;  %v623_v62 = vmul.f32 %v607_v58, %v591_v57  ;;  %v601_v5 = vld [vmem:[#allocation2 + $0x10] sm:$0xff] }
 0x14a   : > { %1143 = vmatpush.msra.mxu3 %v649_v36  ;;  %741 = vmatpush.msra.mxu1 %v649_v36  ;;  %v639_v60 = vld [vmem:[#allocation9] sm:$0xff]  ;;  %v616_v0 = vld [vmem:[%s1922_s13 + $0x48] sm:$0xff]  ;;  %v617_v6 = vld [vmem:[%s1922_s13 + $0x50] sm:$0xff] }
 0x14b   : > { %1128 = vmatpush.msra.mxu2 %v664_v37  ;;  %677 = vmatpush.msra.mxu0 %v664_v37  ;;  %v600_v63 = vld [vmem:[#allocation2 + $0x20] sm:$0xff]  ;;  %v608_v2 = vld [vmem:[%s1922_s13 + $0x8] sm:$0xff]  ;;  %v593_v7 = vld [vmem:[#allocation2 + $0x58] sm:$0xff]  ;;  %v633_v9 = vmul.f32 %v617_v6, %v601_v5 }
 0x14c   : > { %1144 = vmatpush.msra.mxu3 %v648_v38  ;;  %742 = vmatpush.msra.mxu1 %v648_v38  ;;  %v592_v1 = vld [vmem:[#allocation2] sm:$0xff]  ;;  %v632_v3 = vmul.f32 %v616_v0, %v600_v63  ;;  %v609_v8 = vld [vmem:[%s1922_s13 + $0x10] sm:$0xff]  ;;  %v602_v11 = vld [vmem:[#allocation2 + $0x38] sm:$0xff] }
 0x14d   : > { %1129 = vmatpush.msra.mxu2 %v663_v39  ;;  %678 = vmatpush.msra.mxu0 %v663_v39  ;;  %v624_v4 = vmul.f32 %v608_v2, %v592_v1  ;;  %v625_v10 = vmul.f32 %v609_v8, %v593_v7  ;;  %v618_v12 = vld [vmem:[%s1922_s13 + $0x58] sm:$0xff]  ;;  %v603_v17 = vld [vmem:[#allocation2 + $0x60] sm:$0xff]  ;;  %v595_v19 = vld [vmem:[#allocation2 + $0x50] sm:$0xff] }
 0x14e   : > { %1145 = vmatpush.msra.mxu3 %v647_v40  ;;  %743 = vmatpush.msra.mxu1 %v647_v40  ;;  %v594_v13 = vld [vmem:[#allocation2 + $0x18] sm:$0xff]  ;;  %v634_v15 = vmul.f32 %v618_v12, %v602_v11  ;;  %v619_v18 = vld [vmem:[%s1922_s13 + $0x60] sm:$0xff]  ;;  %v604_v23 = vld [vmem:[#allocation2 + $0x70] sm:$0xff] }
 0x14f   : > { %1130 = vmatpush.msra.mxu2 %v662_v41  ;;  %679 = vmatpush.msra.mxu0 %v662_v41  ;;  %v610_v14 = vld [vmem:[%s1922_s13 + $0x18] sm:$0xff]  ;;  %v611_v20 = vld [vmem:[%s1922_s13 + $0x20] sm:$0xff]  ;;  %v635_v21 = vmul.f32 %v619_v18, %v603_v17  ;;  %v620_v24 = vld [vmem:[%s1922_s13 + $0x68] sm:$0xff] }
 0x150   : > { %1146 = vmatpush.msra.mxu3 %v646_v42  ;;  %744 = vmatpush.msra.mxu1 %v646_v42  ;;  %v626_v16 = vmul.f32 %v610_v14, %v594_v13  ;;  %v627_v22 = vmul.f32 %v611_v20, %v595_v19  ;;  %v596_v25 = vld [vmem:[#allocation2 + $0x68] sm:$0xff]  ;;  %v636_v27 = vmul.f32 %v620_v24, %v604_v23  ;;  %v605_v29 = vld [vmem:[#allocation2 + $0x78] sm:$0xff]  ;;  %v621_v30 = vld [vmem:[%s1922_s13 + $0x70] sm:$0xff] }
 0x151   : > { %1131 = vmatpush.msra.mxu2 %v661_v43  ;;  %680 = vmatpush.msra.mxu0 %v661_v43  ;;  %v612_v26 = vld [vmem:[%s1922_s13 + $0x28] sm:$0xff]  ;;  %v613_v32 = vld [vmem:[%s1922_s13 + $0x30] sm:$0xff]  ;;  %v637_v33 = vmul.f32 %v621_v30, %v605_v29  ;;  %v622_v36 = vld [vmem:[%s1922_s13 + $0x78] sm:$0xff] }
 0x152   : > { %1147 = vmatpush.msra.mxu3 %v645_v44  ;;  %745 = vmatpush.msra.mxu1 %v645_v44  ;;  %v628_v28 = vmul.f32 %v612_v26, %v596_v25  ;;  %v597_v31 = vld [vmem:[#allocation2 + $0x8] sm:$0xff]  ;;  %v614_v38 = vld [vmem:[%s1922_s13 + $0x38] sm:$0xff]  ;;  %v1979_v41 = vld [vmem:[%s2129_s27] ss:$0 sm:$0xff] }
 0x153   : > { %1132 = vmatpush.msra.mxu2 %v660_v45  ;;  %681 = vmatpush.msra.mxu0 %v660_v45  ;;  %v629_v34 = vmul.f32 %v613_v32, %v597_v31  ;;  %v606_v35 = vld [vmem:[#allocation2 + $0x28] sm:$0xff] }
 0x154   : > { %1148 = vmatpush.msra.mxu3 %v644_v46  ;;  %746 = vmatpush.msra.mxu1 %v644_v46  ;;  %v598_v37 = vld [vmem:[#allocation2 + $0x48] sm:$0xff]  ;;  %v638_v39 = vmul.f32 %v622_v36, %v606_v35 }
 0x155   : > { %1133 = vmatpush.msra.mxu2 %v659_v47  ;;  %682 = vmatpush.msra.mxu0 %v659_v47  ;;  %v630_v40 = vmul.f32 %v614_v38, %v598_v37 }
 0x156   : > { %1149 = vmatpush.msra.mxu3 %v643_v48  ;;  %747 = vmatpush.msra.mxu1 %v643_v48 }
 0x157   : > { %1134 = vmatpush.msra.mxu2 %v658_v49  ;;  %683 = vmatpush.msra.mxu0 %v658_v49 }
 0x158   : > { %1150 = vmatpush.msra.mxu3 %v642_v50  ;;  %748 = vmatpush.msra.mxu1 %v642_v50 }
 0x159   : > { %1135 = vmatpush.msra.mxu2 %v657_v51  ;;  %684 = vmatpush.msra.mxu0 %v657_v51 }
 0x15a   : > { %1151 = vmatpush.msra.mxu3 %v641_v52  ;;  %749 = vmatpush.msra.mxu1 %v641_v52 }
 0x15b   : > { %1136 = vmatpush.msra.mxu2 %v656_v55  ;;  %685 = vmatpush.msra.mxu0 %v656_v55 }
 0x15c   : > { %1152 = vmatpush.msra.mxu3 %v640_v56  ;;  %750 = vmatpush.msra.mxu1 %v640_v56 }
 0x15d   : > { %1137 = vmatpush.msra.mxu2 %v655_v59  ;;  %686 = vmatpush.msra.mxu0 %v655_v59 }
 0x15e   : > { %1153 = vmatpush.msra.mxu3 %v639_v60  ;;  %711 = vmatmul.f32.vlgmr.msra.gmra.mxu2 %v631_v61 }
 0x15f   : > { %776 = vmatmul.f32.vlgmr.msra.gmra.mxu3 %v599_v53  ;;  %751 = vmatpush.msra.mxu1 %v639_v60 }
 0x160   : > { %687 = vmatmul.f32.vlgmr.msra.gmra.mxu0 %v623_v62  ;;  %752 = vmatmul.f32.vlgmr.msra.gmra.mxu1 %v591_v57 }
 0x166   : > { %714 = vmatmul.f32.gmra.mxu2 %v632_v3 }
 0x167   : > { %779 = vmatmul.f32.gmra.mxu3 %v600_v63 }
 0x168   : > { %690 = vmatmul.f32.gmra.mxu0 %v624_v4  ;;  %755 = vmatmul.f32.gmra.mxu1 %v592_v1 }
 0x16e   : > { %717 = vmatmul.f32.gmra.mxu2 %v633_v9 }
 0x16f   : > { %782 = vmatmul.f32.gmra.mxu3 %v601_v5 }
 0x170   : > { %693 = vmatmul.f32.gmra.mxu0 %v625_v10  ;;  %758 = vmatmul.f32.gmra.mxu1 %v593_v7 }
 0x176   : > { %720 = vmatmul.f32.gmra.mxu2 %v634_v15 }
 0x177   : > { %785 = vmatmul.f32.gmra.mxu3 %v602_v11 }
 0x178   : > { %696 = vmatmul.f32.gmra.mxu0 %v626_v16  ;;  %761 = vmatmul.f32.gmra.mxu1 %v594_v13 }
 0x17e   : > { %723 = vmatmul.f32.gmra.mxu2 %v635_v21 }
 0x17f   : > { %788 = vmatmul.f32.gmra.mxu3 %v603_v17 }
 0x180   : > { %699 = vmatmul.f32.gmra.mxu0 %v627_v22  ;;  %764 = vmatmul.f32.gmra.mxu1 %v595_v19 }
 0x186   : > { %726 = vmatmul.f32.gmra.mxu2 %v636_v27 }
 0x187   : > { %791 = vmatmul.f32.gmra.mxu3 %v604_v23 }
 0x188   : > { %702 = vmatmul.f32.gmra.mxu0 %v628_v28  ;;  %767 = vmatmul.f32.gmra.mxu1 %v596_v25 }
 0x18e   : > { %729 = vmatmul.f32.gmra.mxu2 %v637_v33 }
 0x18f   : > { %794 = vmatmul.f32.gmra.mxu3 %v605_v29 }
 0x190   : > { %705 = vmatmul.f32.gmra.mxu0 %v629_v34  ;;  %770 = vmatmul.f32.gmra.mxu1 %v597_v31 }
 0x196   : > { %732 = vmatmul.f32.gmra.mxu2 %v638_v39 }
 0x197   : > { %797 = vmatmul.f32.gmra.mxu3 %v606_v35 }
 0x198   : > { %708 = vmatmul.f32.gmra.mxu0 %v630_v40  ;;  %773 = vmatmul.f32.gmra.mxu1 %v598_v37 }
 0x1dd   : > { %v688_v42 = vpop.f32.mrf.mxu0  ;;  %v753_v43 = vpop.f32.mrf.mxu1 }
 0x1de   : > { %v754_v44 = vadd.f32 %v753_v43, %v688_v42 }
 0x1e0   : > { %v805_v45 = vadd.f32 %v1979_v41, %v754_v44 }
 0x1e1   : > { %v712_v46 = vpop.f32.mrf.mxu2 }
 0x1e2   : > { %v777_v47 = vpop.f32.mrf.mxu3  ;;  %821 = vst [vmem:[%s1932_s20] sm:$0xff] %v805_v45 }
 0x1e3   : > { %v778_v48 = vadd.f32 %v777_v47, %v712_v46 }
 0x1e5   : > { %v813_v49 = vadd.f32 %v1979_v41, %v778_v48  ;;  %v691_v50 = vpop.f32.mrf.mxu0  ;;  %v756_v51 = vpop.f32.mrf.mxu1 }
 0x1e6   : > { %v757_v52 = vadd.f32 %v756_v51, %v691_v50 }
 0x1e7   : > { %829 = vst [vmem:[%s1932_s20 + $0x40] sm:$0xff] %v813_v49 }
 0x1e8   : > { %v806_v53 = vadd.f32 %v1979_v41, %v757_v52 }
 0x1e9   : > { %v715_v54 = vpop.f32.mrf.mxu2 }
 0x1ea   : > { %v780_v55 = vpop.f32.mrf.mxu3  ;;  %822 = vst [vmem:[%s1932_s20 + $0x8] sm:$0xff] %v806_v53 }
 0x1eb   : > { %v781_v56 = vadd.f32 %v780_v55, %v715_v54 }
 0x1ed   : > { %v814_v57 = vadd.f32 %v1979_v41, %v781_v56  ;;  %v694_v58 = vpop.f32.mrf.mxu0  ;;  %v759_v59 = vpop.f32.mrf.mxu1 }
 0x1ee   : > { %v760_v60 = vadd.f32 %v759_v59, %v694_v58 }
 0x1ef   : > { %830 = vst [vmem:[%s1932_s20 + $0x48] sm:$0xff] %v814_v57 }
 0x1f0   : > { %v807_v61 = vadd.f32 %v1979_v41, %v760_v60 }
 0x1f1   : > { %v718_v62 = vpop.f32.mrf.mxu2 }
 0x1f2   : > { %v783_v63 = vpop.f32.mrf.mxu3  ;;  %823 = vst [vmem:[%s1932_s20 + $0x10] sm:$0xff] %v807_v61 }
 0x1f3   : > { %v784_v0 = vadd.f32 %v783_v63, %v718_v62 }
 0x1f5   : > { %v815_v1 = vadd.f32 %v1979_v41, %v784_v0  ;;  %v697_v2 = vpop.f32.mrf.mxu0  ;;  %v762_v3 = vpop.f32.mrf.mxu1 }
 0x1f6   : > { %v763_v4 = vadd.f32 %v762_v3, %v697_v2 }
 0x1f7   : > { %831 = vst [vmem:[%s1932_s20 + $0x50] sm:$0xff] %v815_v1 }
 0x1f8   : > { %v808_v5 = vadd.f32 %v1979_v41, %v763_v4 }
 0x1f9   : > { %v721_v6 = vpop.f32.mrf.mxu2 }
 0x1fa   : > { %v786_v7 = vpop.f32.mrf.mxu3  ;;  %824 = vst [vmem:[%s1932_s20 + $0x18] sm:$0xff] %v808_v5 }
 0x1fb   : > { %v787_v8 = vadd.f32 %v786_v7, %v721_v6 }
 0x1fd   : > { %v816_v9 = vadd.f32 %v1979_v41, %v787_v8  ;;  %v700_v10 = vpop.f32.mrf.mxu0  ;;  %v765_v11 = vpop.f32.mrf.mxu1 }
 0x1fe   : > { %v766_v12 = vadd.f32 %v765_v11, %v700_v10 }
 0x1ff   : > { %832 = vst [vmem:[%s1932_s20 + $0x58] sm:$0xff] %v816_v9 }
 0x200   : > { %v809_v13 = vadd.f32 %v1979_v41, %v766_v12 }
 0x201   : > { %v724_v14 = vpop.f32.mrf.mxu2 }
 0x202   : > { %v789_v15 = vpop.f32.mrf.mxu3  ;;  %825 = vst [vmem:[%s1932_s20 + $0x20] sm:$0xff] %v809_v13 }
 0x203   : > { %v790_v16 = vadd.f32 %v789_v15, %v724_v14 }
 0x205   : > { %v817_v17 = vadd.f32 %v1979_v41, %v790_v16  ;;  %v703_v18 = vpop.f32.mrf.mxu0  ;;  %v768_v19 = vpop.f32.mrf.mxu1 }
 0x206   : > { %v769_v20 = vadd.f32 %v768_v19, %v703_v18 }
 0x207   : > { %833 = vst [vmem:[%s1932_s20 + $0x60] sm:$0xff] %v817_v17 }
 0x208   : > { %v810_v21 = vadd.f32 %v1979_v41, %v769_v20 }
 0x209   : > { %v727_v22 = vpop.f32.mrf.mxu2 }
 0x20a   : > { %v792_v23 = vpop.f32.mrf.mxu3  ;;  %826 = vst [vmem:[%s1932_s20 + $0x28] sm:$0xff] %v810_v21 }
 0x20b   : > { %v793_v24 = vadd.f32 %v792_v23, %v727_v22 }
 0x20d   : > { %v818_v25 = vadd.f32 %v1979_v41, %v793_v24  ;;  %v706_v26 = vpop.f32.mrf.mxu0  ;;  %v771_v27 = vpop.f32.mrf.mxu1 }
 0x20e   : > { %v772_v28 = vadd.f32 %v771_v27, %v706_v26 }
 0x20f   : > { %834 = vst [vmem:[%s1932_s20 + $0x68] sm:$0xff] %v818_v25 }
 0x210   : > { %v811_v29 = vadd.f32 %v1979_v41, %v772_v28 }
 0x211   : > { %v730_v30 = vpop.f32.mrf.mxu2 }
 0x212   : > { %v795_v31 = vpop.f32.mrf.mxu3  ;;  %827 = vst [vmem:[%s1932_s20 + $0x30] sm:$0xff] %v811_v29 }
 0x213   : > { %v796_v32 = vadd.f32 %v795_v31, %v730_v30 }
 0x215   : > { %v819_v33 = vadd.f32 %v1979_v41, %v796_v32  ;;  %v709_v34 = vpop.f32.mrf.mxu0  ;;  %v774_v35 = vpop.f32.mrf.mxu1 }
 0x216   : > { %v775_v36 = vadd.f32 %v774_v35, %v709_v34 }
 0x217   : > { %835 = vst [vmem:[%s1932_s20 + $0x70] sm:$0xff] %v819_v33 }
 0x218   : > { %v812_v37 = vadd.f32 %v1979_v41, %v775_v36 }
 0x219   : > { %v733_v38 = vpop.f32.mrf.mxu2 }
 0x21a   : > { %v798_v39 = vpop.f32.mrf.mxu3  ;;  %828 = vst [vmem:[%s1932_s20 + $0x38] sm:$0xff] %v812_v37 }
 0x21b   : > { %v799_v40 = vadd.f32 %v798_v39, %v733_v38 }
 0x21d   : > { %v820_v42 = vadd.f32 %v1979_v41, %v799_v40 }
 0x21f   : > { %836 = vst [vmem:[%s1932_s20 + $0x78] sm:$0xff] %v820_v42 }
 0x220 PF: > { %s2130_s12 = sld [smem:[#allocation20_spill]]  ;;  %s850_s16 = sshll.u32 %s1932_s20, 4  ;;  %s851_s16 = int_to_ptr.vmem [resolvable:$true] %s850_s16 }
 0x221   : > { %s2131_s14 = sld [smem:[#allocation30_spill]]  ;;  %s838_s3 = scalar_lea.sflag [#allocation5], %s350_s0 }
 0x226   : > { %s1034_s17 = sshll.u32 %s2130_s12, 7 }
 0x227   : > { %s849_s1 = scalar_lea.hbm %s2131_s14, %s1034_s17  ;;  %s1489_s6 = scalar_lea.hbm %s2131_s14, 384 }
 0x228   : > { %s852_s15 = sshll.u32 %s849_s1, 4  ;;  %s853_s15 = int_to_ptr.hbm [resolvable:$true] %s852_s15 }
 0x229   : > { %s1483_s25 = sshra.s32 %s853_s15, 4  ;;  %s1484_s25 = int_to_ptr.hbm [resolvable:$true] %s1483_s25 }
 0x22a   : > { %s1485_s13 = scalar_lea.hbm %s1484_s25, 128  ;;  %p1490_p13 = scmp.lt.s32.totalorder %s1484_s25, %s2131_s14 }
 0x22b   : > { %p1486_p8 = scmp.ne.s32.totalorder %s1484_s25, %s1485_s13  ;;  %p1491_p7 = scmp.lt.s32.totalorder %s1489_s6, %s1485_s13 }
 0x22d   : > { %p1487_p0 = pnand %p1486_p8, %p1884_p6  ;;  %p1492_p9 = por %p1491_p7, %p1490_p13 }
 0x22f   : > { %p1488_p3 = pneg %p1487_p0 }
 0x231   : > { %p1493_p10 = pnand %p1492_p9, %p1488_p3 }
 0x233   : > { %1496 = shalt.err (!%p1493_p10)
}
 0x234   : > { %s1636_s0 = smov 128   ;;  %s1637_s20 = smov 8  }
 0x235   : > { %1168 = dma.vmem_to_hbm [thread:$0]  (%p1884_p6), %s851_s16, 2048, %s853_s15, %s838_s3, %s1636_s0, %s1636_s0, %s1637_s20  }
 0x236 PF: > { %p1196_p11 = scmp.ge.s32.totalorder %s1627_s10, 2  ;;  %s867_s12 = sand.u32 1, %s1575_s21  }
 0x237   : > { %s868_s17 = scalar_lea.sflag [#allocation5], %s867_s12 }
 0x238   : > { %p1188_p12 = pnand %p1196_p11, %p1888_p5 }
 0x23a   : > { %p1189_p2 = pneg %p1188_p12 }
 0x23c   : > { %1570 = dma.done.wait (%p1189_p2), %s868_s17, 2048  }
 0x23d   : > { %1572 = vsyncadd (%p1189_p2), %s868_s17, 4294965248  ;;  %s26_s10 = sadd.s32 1, %s1627_s10   ;;  %s2133_s24 = sld [smem:[#allocation18_spill]] }
 0x23e   : > { %p2035_p4 = scmp.ge.s32.totalorder %s26_s10, 8   ;;  %s2134_s4 = sld [smem:[#allocation24_spill]] }
 0x23f   : > { %s2135_s8 = sld [smem:[#allocation21_spill]]  ;;  %s2139_s21 = smov %s1579_s22 }
 0x240   : > { %s2136_s19 = sld [smem:[#allocation22_spill]]  ;;  %s2140_s22 = smov %s1583_s23 }
 0x241   : > { %s2137_s1 = sld [smem:[#allocation23_spill]]  ;;  %s2141_s23 = smov %s1867_s30 }
 0x242   : > { %s2142_s25 = smov %s1595_s26  ;;  %s2144_s27 = smov %s1603_s28 }
 0x243   : > { %s2145_s28 = smov %s1607_s29  ;;  %s2146_s29 = smov %s1839_s5 }
 0x244   : > { %s2143_s26 = smov %s2134_s4  ;;  %s2148_s7 = smov %s1623_s9 }
 0x245   : > { %s2147_s30 = smov %s2135_s8  ;;  %25 = sbr.rel (!%p2035_p4) target bundleno = 20 (0x14), region = 129 }
 0x246   : > { %s2149_s8 = smov %s2136_s19 }
 0x247   : > { %s2150_s9 = smov %s2137_s1 }
 0x24a   :  { %874 = vsyncpa [#allocation4], 1 }
 0x24b   :  { %876 = vsyncpa [#allocation4 + $0x1], 1 }
 0x24c   :  { %877 = vsyncpa [#allocation7], 1 }
 0x24d   :  { %879 = vsyncpa [#allocation7 + $0x1], 1 }
 0x24e   :  { %880 = vsyncpa [#allocation10], 1 }
 0x24f   :  { %881 = vsyncpa [#allocation5], 1 }
 0x250   :  { %883 = vsyncpa [#allocation5 + $0x1], 1 }

</bundles_post_ra>
